<compile_context>
chip_gen: v7x
topology: tpu7x:2x2x1
jax: 0.10.0
libtpu: 0.0.40
codegen_flags: <defaults>
</compile_context>

<pallas_src>
import jax
import jax.numpy as jnp
from jax import lax
from jax.experimental import pallas as pl
from jax.experimental.pallas import tpu as pltpu  # noqa: F401  (TPU backend)


def _gru_fc_kernel(x_ref, wih_ref, whh_ref, bih_ref, bhh_ref,
                   wfc_ref, bfc_ref, out_ref):
    B, T, D = x_ref.shape
    H3 = whh_ref.shape[1]
    H = H3 // 3

    # ---- Hoisted input projection: ONE matmul for all T timesteps.
    # (B, T, D) -> (B*T, D): splits/merges only full (8,128) sublane tiles.
    x_all = x_ref[...].reshape(B * T, D)
    gx_all = (jnp.dot(x_all, wih_ref[...], preferred_element_type=jnp.float32)
              + bih_ref[...]).reshape(B, T, H3)            # (B, T, 3H)

    # ---- Hoisted loop invariants (broadcast once, not per unrolled step).
    w_hh = whh_ref[...]                                     # (H, 3H)
    b_hh = jnp.broadcast_to(bhh_ref[...], (B, H3))          # (B, 3H)

    h = jnp.zeros((B, H), jnp.float32)

    # ---- Fully-unrolled time recurrence (T static => all slices static);
    # equivalent to lax.fori_loop(0, T, ..., unroll=True) but with zero
    # dynamic indexing.  h stays resident in vregs across steps.
    # PyTorch GRU gate order: (r, z, n);  n uses r * (W_hn h + b_hn).
    for t in range(T):
        gx = gx_all[:, t, :]                                # (B, 3H)
        gh = jnp.dot(h, w_hh, preferred_element_type=jnp.float32) + b_hh
        # Single sigmoid over the concatenated r|z slab.
        rz = jax.nn.sigmoid(gx[:, :2 * H] + gh[:, :2 * H])
        r = rz[:, :H]
        z = rz[:, H:]
        n = jnp.tanh(gx[:, 2 * H:] + r * gh[:, 2 * H:])
        h = (1.0 - z) * n + z * h

    # ---- Fused fc_out(hn).
    out_ref[...] = (jnp.dot(h, wfc_ref[...], preferred_element_type=jnp.float32)
                    + bfc_ref[...]).astype(out_ref.dtype)


def gru_fc_forward(x, w_ih, w_hh, b_ih, b_hh, w_fc, b_fc):
    """x: [B, T, D] float32 (batch_first). Returns [B, 1, 16] (== User_Model.forward)."""
    B, T, D = x.shape
    H3 = w_ih.shape[0]
    O = w_fc.shape[0]

    # One-time tiny weight transposes / bias reshapes (fused by XLA).
    w_ih_t = jnp.transpose(w_ih)      # (D, 3H)
    w_hh_t = jnp.transpose(w_hh)      # (H, 3H)
    w_fc_t = jnp.transpose(w_fc)      # (H, O)
    b_ih2 = b_ih.reshape(1, H3)
    b_hh2 = b_hh.reshape(1, H3)
    b_fc2 = b_fc.reshape(1, O)

    # Single invocation, no grid: all operands map fully into VMEM.
    out = pl.pallas_call(
        _gru_fc_kernel,
        out_shape=jax.ShapeDtypeStruct((B, O), jnp.float32),
    )(x, w_ih_t, w_hh_t, b_ih2, b_hh2, w_fc_t, b_fc2)

    # PyTorch: hn [1,B,H] -> fc_out -> [1,B,16] -> permute(1,0,2) -> [B,1,16]
    return out.reshape(B, 1, O)


def _reference_forward(x, w_ih, w_hh, b_ih, b_hh, w_fc, b_fc):
    """Pure-JAX reference of nn.GRU(batch_first) + Linear."""
    B, T, D = x.shape
    H = w_hh.shape[1]

    def step(h, x_t):
        gx = x_t @ w_ih.T + b_ih
        gh = h @ w_hh.T + b_hh
        r = jax.nn.sigmoid(gx[:, :H] + gh[:, :H])
        z = jax.nn.sigmoid(gx[:, H:2 * H] + gh[:, H:2 * H])
        n = jnp.tanh(gx[:, 2 * H:] + r * gh[:, 2 * H:])
        h_new = (1.0 - z) * n + z * h
        return h_new, None

    h0 = jnp.zeros((B, H), jnp.float32)
    hT, _ = lax.scan(step, h0, jnp.transpose(x, (1, 0, 2)))
    pre_power = hT @ w_fc.T + b_fc
    return pre_power.reshape(B, 1, -1)


if __name__ == "__main__":
    # Small shapes consistent with the module: batch=2, seq=8, input_dim=4, hidden=32
    B, T, D, H, O = 2, 8, 4, 32, 16

    key = jax.random.PRNGKey(0)
    keys = jax.random.split(key, 8)
    scale = 1.0 / jnp.sqrt(jnp.float32(H))

    x = jax.random.normal(keys[0], (B, T, D), dtype=jnp.float32)
    w_ih = jax.random.uniform(keys[1], (3 * H, D), jnp.float32, -scale, scale)
    w_hh = jax.random.uniform(keys[2], (3 * H, H), jnp.float32, -scale, scale)
    b_ih = jax.random.uniform(keys[3], (3 * H,), jnp.float32, -scale, scale)
    b_hh = jax.random.uniform(keys[4], (3 * H,), jnp.float32, -scale, scale)
    w_fc = jax.random.uniform(keys[5], (O, H), jnp.float32, -scale, scale)
    b_fc = jax.random.uniform(keys[6], (O,), jnp.float32, -scale, scale)

    fwd = jax.jit(gru_fc_forward)
    out = jax.block_until_ready(fwd(x, w_ih, w_hh, b_ih, b_hh, w_fc, b_fc))

    ref = _reference_forward(x, w_ih, w_hh, b_ih, b_hh, w_fc, b_fc)
    assert out.shape == (B, 1, O), out.shape
    assert jnp.allclose(out, ref, atol=1e-5, rtol=1e-5), float(jnp.max(jnp.abs(out - ref)))

    print("KERNEL_OK")
</pallas_src>

<mosaic_0001>
module attributes {stable_mosaic.version = 11 : i64} {
  func.func @_gru_fc_kernel(%arg0: memref<2x8x4xf32, #tpu.memory_space<vmem>>, %arg1: memref<4x96xf32, #tpu.memory_space<vmem>>, %arg2: memref<32x96xf32, #tpu.memory_space<vmem>>, %arg3: memref<1x96xf32, #tpu.memory_space<vmem>>, %arg4: memref<1x96xf32, #tpu.memory_space<vmem>>, %arg5: memref<32x16xf32, #tpu.memory_space<vmem>>, %arg6: memref<1x16xf32, #tpu.memory_space<vmem>>, %arg7: memref<2x16xf32, #tpu.memory_space<vmem>>) attributes {dimension_semantics = [], scalar_prefetch = 0 : i64, scratch_operands = 0 : i64, tpu.core_type = #tpu.core_type<tc>} {
    %c0 = arith.constant 0 : index
    %c0_0 = arith.constant 0 : index
    %c0_1 = arith.constant 0 : index
    %0 = vector.load %arg0[%c0, %c0_0, %c0_1] : memref<2x8x4xf32, #tpu.memory_space<vmem>>, vector<2x8x4xf32>
    %1 = vector.shape_cast %0 : vector<2x8x4xf32> to vector<16x4xf32>
    %c0_2 = arith.constant 0 : index
    %c0_3 = arith.constant 0 : index
    %2 = vector.load %arg1[%c0_2, %c0_3] : memref<4x96xf32, #tpu.memory_space<vmem>>, vector<4x96xf32>
    %cst = arith.constant dense<0.000000e+00> : vector<16x96xf32>
    %3 = tpu.matmul %1, %2, %cst {dimension_numbers = #tpu.dot_dimension_numbers<[1], [0], [0], [1], [0, 0, 1, 1], [], []>} : vector<16x4xf32>, vector<4x96xf32>, vector<16x96xf32> -> vector<16x96xf32>
    %c0_4 = arith.constant 0 : index
    %c0_5 = arith.constant 0 : index
    %4 = vector.load %arg3[%c0_4, %c0_5] : memref<1x96xf32, #tpu.memory_space<vmem>>, vector<1x96xf32>
    %5 = vector.broadcast %4 : vector<1x96xf32> to vector<16x96xf32>
    %6 = arith.addf %3, %5 : vector<16x96xf32>
    %7 = vector.shape_cast %6 : vector<16x96xf32> to vector<2x8x96xf32>
    %c0_6 = arith.constant 0 : index
    %c0_7 = arith.constant 0 : index
    %8 = vector.load %arg2[%c0_6, %c0_7] : memref<32x96xf32, #tpu.memory_space<vmem>>, vector<32x96xf32>
    %c0_8 = arith.constant 0 : index
    %c0_9 = arith.constant 0 : index
    %9 = vector.load %arg4[%c0_8, %c0_9] : memref<1x96xf32, #tpu.memory_space<vmem>>, vector<1x96xf32>
    %10 = vector.shape_cast %9 : vector<1x96xf32> to vector<1x96xf32>
    %11 = vector.broadcast %10 : vector<1x96xf32> to vector<2x96xf32>
    %cst_10 = arith.constant 0.000000e+00 : f32
    %12 = vector.broadcast %cst_10 : f32 to vector<2x32xf32>
    %13 = vector.extract_strided_slice %7 {offsets = [0, 0, 0], sizes = [2, 1, 96], strides = [1, 1, 1]} : vector<2x8x96xf32> to vector<2x1x96xf32>
    %14 = vector.shape_cast %13 : vector<2x1x96xf32> to vector<2x96xf32>
    %cst_11 = arith.constant dense<0.000000e+00> : vector<2x96xf32>
    %15 = tpu.matmul %12, %8, %cst_11 {dimension_numbers = #tpu.dot_dimension_numbers<[1], [0], [0], [1], [0, 0, 1, 1], [], []>} : vector<2x32xf32>, vector<32x96xf32>, vector<2x96xf32> -> vector<2x96xf32>
    %16 = arith.addf %15, %11 : vector<2x96xf32>
    %17 = vector.extract_strided_slice %14 {offsets = [0, 0], sizes = [2, 64], strides = [1, 1]} : vector<2x96xf32> to vector<2x64xf32>
    %18 = vector.extract_strided_slice %16 {offsets = [0, 0], sizes = [2, 64], strides = [1, 1]} : vector<2x96xf32> to vector<2x64xf32>
    %19 = arith.addf %17, %18 : vector<2x64xf32>
    %20 = arith.negf %19 : vector<2x64xf32>
    %21 = math.exp %20 : vector<2x64xf32>
    %cst_12 = arith.constant 1.000000e+00 : f32
    %22 = vector.broadcast %cst_12 : f32 to vector<2x64xf32>
    %23 = arith.addf %22, %21 : vector<2x64xf32>
    %24 = arith.divf %22, %23 : vector<2x64xf32>
    %25 = vector.extract_strided_slice %24 {offsets = [0, 0], sizes = [2, 32], strides = [1, 1]} : vector<2x64xf32> to vector<2x32xf32>
    %26 = vector.extract_strided_slice %24 {offsets = [0, 32], sizes = [2, 32], strides = [1, 1]} : vector<2x64xf32> to vector<2x32xf32>
    %27 = vector.extract_strided_slice %14 {offsets = [0, 64], sizes = [2, 32], strides = [1, 1]} : vector<2x96xf32> to vector<2x32xf32>
    %28 = vector.extract_strided_slice %16 {offsets = [0, 64], sizes = [2, 32], strides = [1, 1]} : vector<2x96xf32> to vector<2x32xf32>
    %29 = arith.mulf %25, %28 : vector<2x32xf32>
    %30 = arith.addf %27, %29 : vector<2x32xf32>
    %31 = math.tanh %30 : vector<2x32xf32>
    %cst_13 = arith.constant 1.000000e+00 : f32
    %32 = vector.broadcast %cst_13 : f32 to vector<2x32xf32>
    %33 = arith.subf %32, %26 : vector<2x32xf32>
    %34 = arith.mulf %33, %31 : vector<2x32xf32>
    %35 = arith.mulf %26, %12 : vector<2x32xf32>
    %36 = arith.addf %34, %35 : vector<2x32xf32>
    %37 = vector.extract_strided_slice %7 {offsets = [0, 1, 0], sizes = [2, 1, 96], strides = [1, 1, 1]} : vector<2x8x96xf32> to vector<2x1x96xf32>
    %38 = vector.shape_cast %37 : vector<2x1x96xf32> to vector<2x96xf32>
    %cst_14 = arith.constant dense<0.000000e+00> : vector<2x96xf32>
    %39 = tpu.matmul %36, %8, %cst_14 {dimension_numbers = #tpu.dot_dimension_numbers<[1], [0], [0], [1], [0, 0, 1, 1], [], []>} : vector<2x32xf32>, vector<32x96xf32>, vector<2x96xf32> -> vector<2x96xf32>
    %40 = arith.addf %39, %11 : vector<2x96xf32>
    %41 = vector.extract_strided_slice %38 {offsets = [0, 0], sizes = [2, 64], strides = [1, 1]} : vector<2x96xf32> to vector<2x64xf32>
    %42 = vector.extract_strided_slice %40 {offsets = [0, 0], sizes = [2, 64], strides = [1, 1]} : vector<2x96xf32> to vector<2x64xf32>
    %43 = arith.addf %41, %42 : vector<2x64xf32>
    %44 = arith.negf %43 : vector<2x64xf32>
    %45 = math.exp %44 : vector<2x64xf32>
    %cst_15 = arith.constant 1.000000e+00 : f32
    %46 = vector.broadcast %cst_15 : f32 to vector<2x64xf32>
    %47 = arith.addf %46, %45 : vector<2x64xf32>
    %48 = arith.divf %46, %47 : vector<2x64xf32>
    %49 = vector.extract_strided_slice %48 {offsets = [0, 0], sizes = [2, 32], strides = [1, 1]} : vector<2x64xf32> to vector<2x32xf32>
    %50 = vector.extract_strided_slice %48 {offsets = [0, 32], sizes = [2, 32], strides = [1, 1]} : vector<2x64xf32> to vector<2x32xf32>
    %51 = vector.extract_strided_slice %38 {offsets = [0, 64], sizes = [2, 32], strides = [1, 1]} : vector<2x96xf32> to vector<2x32xf32>
    %52 = vector.extract_strided_slice %40 {offsets = [0, 64], sizes = [2, 32], strides = [1, 1]} : vector<2x96xf32> to vector<2x32xf32>
    %53 = arith.mulf %49, %52 : vector<2x32xf32>
    %54 = arith.addf %51, %53 : vector<2x32xf32>
    %55 = math.tanh %54 : vector<2x32xf32>
    %cst_16 = arith.constant 1.000000e+00 : f32
    %56 = vector.broadcast %cst_16 : f32 to vector<2x32xf32>
    %57 = arith.subf %56, %50 : vector<2x32xf32>
    %58 = arith.mulf %57, %55 : vector<2x32xf32>
    %59 = arith.mulf %50, %36 : vector<2x32xf32>
    %60 = arith.addf %58, %59 : vector<2x32xf32>
    %61 = vector.extract_strided_slice %7 {offsets = [0, 2, 0], sizes = [2, 1, 96], strides = [1, 1, 1]} : vector<2x8x96xf32> to vector<2x1x96xf32>
    %62 = vector.shape_cast %61 : vector<2x1x96xf32> to vector<2x96xf32>
    %cst_17 = arith.constant dense<0.000000e+00> : vector<2x96xf32>
    %63 = tpu.matmul %60, %8, %cst_17 {dimension_numbers = #tpu.dot_dimension_numbers<[1], [0], [0], [1], [0, 0, 1, 1], [], []>} : vector<2x32xf32>, vector<32x96xf32>, vector<2x96xf32> -> vector<2x96xf32>
    %64 = arith.addf %63, %11 : vector<2x96xf32>
    %65 = vector.extract_strided_slice %62 {offsets = [0, 0], sizes = [2, 64], strides = [1, 1]} : vector<2x96xf32> to vector<2x64xf32>
    %66 = vector.extract_strided_slice %64 {offsets = [0, 0], sizes = [2, 64], strides = [1, 1]} : vector<2x96xf32> to vector<2x64xf32>
    %67 = arith.addf %65, %66 : vector<2x64xf32>
    %68 = arith.negf %67 : vector<2x64xf32>
    %69 = math.exp %68 : vector<2x64xf32>
    %cst_18 = arith.constant 1.000000e+00 : f32
    %70 = vector.broadcast %cst_18 : f32 to vector<2x64xf32>
    %71 = arith.addf %70, %69 : vector<2x64xf32>
    %72 = arith.divf %70, %71 : vector<2x64xf32>
    %73 = vector.extract_strided_slice %72 {offsets = [0, 0], sizes = [2, 32], strides = [1, 1]} : vector<2x64xf32> to vector<2x32xf32>
    %74 = vector.extract_strided_slice %72 {offsets = [0, 32], sizes = [2, 32], strides = [1, 1]} : vector<2x64xf32> to vector<2x32xf32>
    %75 = vector.extract_strided_slice %62 {offsets = [0, 64], sizes = [2, 32], strides = [1, 1]} : vector<2x96xf32> to vector<2x32xf32>
    %76 = vector.extract_strided_slice %64 {offsets = [0, 64], sizes = [2, 32], strides = [1, 1]} : vector<2x96xf32> to vector<2x32xf32>
    %77 = arith.mulf %73, %76 : vector<2x32xf32>
    %78 = arith.addf %75, %77 : vector<2x32xf32>
    %79 = math.tanh %78 : vector<2x32xf32>
    %cst_19 = arith.constant 1.000000e+00 : f32
    %80 = vector.broadcast %cst_19 : f32 to vector<2x32xf32>
    %81 = arith.subf %80, %74 : vector<2x32xf32>
    %82 = arith.mulf %81, %79 : vector<2x32xf32>
    %83 = arith.mulf %74, %60 : vector<2x32xf32>
    %84 = arith.addf %82, %83 : vector<2x32xf32>
    %85 = vector.extract_strided_slice %7 {offsets = [0, 3, 0], sizes = [2, 1, 96], strides = [1, 1, 1]} : vector<2x8x96xf32> to vector<2x1x96xf32>
    %86 = vector.shape_cast %85 : vector<2x1x96xf32> to vector<2x96xf32>
    %cst_20 = arith.constant dense<0.000000e+00> : vector<2x96xf32>
    %87 = tpu.matmul %84, %8, %cst_20 {dimension_numbers = #tpu.dot_dimension_numbers<[1], [0], [0], [1], [0, 0, 1, 1], [], []>} : vector<2x32xf32>, vector<32x96xf32>, vector<2x96xf32> -> vector<2x96xf32>
    %88 = arith.addf %87, %11 : vector<2x96xf32>
    %89 = vector.extract_strided_slice %86 {offsets = [0, 0], sizes = [2, 64], strides = [1, 1]} : vector<2x96xf32> to vector<2x64xf32>
    %90 = vector.extract_strided_slice %88 {offsets = [0, 0], sizes = [2, 64], strides = [1, 1]} : vector<2x96xf32> to vector<2x64xf32>
    %91 = arith.addf %89, %90 : vector<2x64xf32>
    %92 = arith.negf %91 : vector<2x64xf32>
    %93 = math.exp %92 : vector<2x64xf32>
    %cst_21 = arith.constant 1.000000e+00 : f32
    %94 = vector.broadcast %cst_21 : f32 to vector<2x64xf32>
    %95 = arith.addf %94, %93 : vector<2x64xf32>
    %96 = arith.divf %94, %95 : vector<2x64xf32>
    %97 = vector.extract_strided_slice %96 {offsets = [0, 0], sizes = [2, 32], strides = [1, 1]} : vector<2x64xf32> to vector<2x32xf32>
    %98 = vector.extract_strided_slice %96 {offsets = [0, 32], sizes = [2, 32], strides = [1, 1]} : vector<2x64xf32> to vector<2x32xf32>
    %99 = vector.extract_strided_slice %86 {offsets = [0, 64], sizes = [2, 32], strides = [1, 1]} : vector<2x96xf32> to vector<2x32xf32>
    %100 = vector.extract_strided_slice %88 {offsets = [0, 64], sizes = [2, 32], strides = [1, 1]} : vector<2x96xf32> to vector<2x32xf32>
    %101 = arith.mulf %97, %100 : vector<2x32xf32>
    %102 = arith.addf %99, %101 : vector<2x32xf32>
    %103 = math.tanh %102 : vector<2x32xf32>
    %cst_22 = arith.constant 1.000000e+00 : f32
    %104 = vector.broadcast %cst_22 : f32 to vector<2x32xf32>
    %105 = arith.subf %104, %98 : vector<2x32xf32>
    %106 = arith.mulf %105, %103 : vector<2x32xf32>
    %107 = arith.mulf %98, %84 : vector<2x32xf32>
    %108 = arith.addf %106, %107 : vector<2x32xf32>
    %109 = vector.extract_strided_slice %7 {offsets = [0, 4, 0], sizes = [2, 1, 96], strides = [1, 1, 1]} : vector<2x8x96xf32> to vector<2x1x96xf32>
    %110 = vector.shape_cast %109 : vector<2x1x96xf32> to vector<2x96xf32>
    %cst_23 = arith.constant dense<0.000000e+00> : vector<2x96xf32>
    %111 = tpu.matmul %108, %8, %cst_23 {dimension_numbers = #tpu.dot_dimension_numbers<[1], [0], [0], [1], [0, 0, 1, 1], [], []>} : vector<2x32xf32>, vector<32x96xf32>, vector<2x96xf32> -> vector<2x96xf32>
    %112 = arith.addf %111, %11 : vector<2x96xf32>
    %113 = vector.extract_strided_slice %110 {offsets = [0, 0], sizes = [2, 64], strides = [1, 1]} : vector<2x96xf32> to vector<2x64xf32>
    %114 = vector.extract_strided_slice %112 {offsets = [0, 0], sizes = [2, 64], strides = [1, 1]} : vector<2x96xf32> to vector<2x64xf32>
    %115 = arith.addf %113, %114 : vector<2x64xf32>
    %116 = arith.negf %115 : vector<2x64xf32>
    %117 = math.exp %116 : vector<2x64xf32>
    %cst_24 = arith.constant 1.000000e+00 : f32
    %118 = vector.broadcast %cst_24 : f32 to vector<2x64xf32>
    %119 = arith.addf %118, %117 : vector<2x64xf32>
    %120 = arith.divf %118, %119 : vector<2x64xf32>
    %121 = vector.extract_strided_slice %120 {offsets = [0, 0], sizes = [2, 32], strides = [1, 1]} : vector<2x64xf32> to vector<2x32xf32>
    %122 = vector.extract_strided_slice %120 {offsets = [0, 32], sizes = [2, 32], strides = [1, 1]} : vector<2x64xf32> to vector<2x32xf32>
    %123 = vector.extract_strided_slice %110 {offsets = [0, 64], sizes = [2, 32], strides = [1, 1]} : vector<2x96xf32> to vector<2x32xf32>
    %124 = vector.extract_strided_slice %112 {offsets = [0, 64], sizes = [2, 32], strides = [1, 1]} : vector<2x96xf32> to vector<2x32xf32>
    %125 = arith.mulf %121, %124 : vector<2x32xf32>
    %126 = arith.addf %123, %125 : vector<2x32xf32>
    %127 = math.tanh %126 : vector<2x32xf32>
    %cst_25 = arith.constant 1.000000e+00 : f32
    %128 = vector.broadcast %cst_25 : f32 to vector<2x32xf32>
    %129 = arith.subf %128, %122 : vector<2x32xf32>
    %130 = arith.mulf %129, %127 : vector<2x32xf32>
    %131 = arith.mulf %122, %108 : vector<2x32xf32>
    %132 = arith.addf %130, %131 : vector<2x32xf32>
    %133 = vector.extract_strided_slice %7 {offsets = [0, 5, 0], sizes = [2, 1, 96], strides = [1, 1, 1]} : vector<2x8x96xf32> to vector<2x1x96xf32>
    %134 = vector.shape_cast %133 : vector<2x1x96xf32> to vector<2x96xf32>
    %cst_26 = arith.constant dense<0.000000e+00> : vector<2x96xf32>
    %135 = tpu.matmul %132, %8, %cst_26 {dimension_numbers = #tpu.dot_dimension_numbers<[1], [0], [0], [1], [0, 0, 1, 1], [], []>} : vector<2x32xf32>, vector<32x96xf32>, vector<2x96xf32> -> vector<2x96xf32>
    %136 = arith.addf %135, %11 : vector<2x96xf32>
    %137 = vector.extract_strided_slice %134 {offsets = [0, 0], sizes = [2, 64], strides = [1, 1]} : vector<2x96xf32> to vector<2x64xf32>
    %138 = vector.extract_strided_slice %136 {offsets = [0, 0], sizes = [2, 64], strides = [1, 1]} : vector<2x96xf32> to vector<2x64xf32>
    %139 = arith.addf %137, %138 : vector<2x64xf32>
    %140 = arith.negf %139 : vector<2x64xf32>
    %141 = math.exp %140 : vector<2x64xf32>
    %cst_27 = arith.constant 1.000000e+00 : f32
    %142 = vector.broadcast %cst_27 : f32 to vector<2x64xf32>
    %143 = arith.addf %142, %141 : vector<2x64xf32>
    %144 = arith.divf %142, %143 : vector<2x64xf32>
    %145 = vector.extract_strided_slice %144 {offsets = [0, 0], sizes = [2, 32], strides = [1, 1]} : vector<2x64xf32> to vector<2x32xf32>
    %146 = vector.extract_strided_slice %144 {offsets = [0, 32], sizes = [2, 32], strides = [1, 1]} : vector<2x64xf32> to vector<2x32xf32>
    %147 = vector.extract_strided_slice %134 {offsets = [0, 64], sizes = [2, 32], strides = [1, 1]} : vector<2x96xf32> to vector<2x32xf32>
    %148 = vector.extract_strided_slice %136 {offsets = [0, 64], sizes = [2, 32], strides = [1, 1]} : vector<2x96xf32> to vector<2x32xf32>
    %149 = arith.mulf %145, %148 : vector<2x32xf32>
    %150 = arith.addf %147, %149 : vector<2x32xf32>
    %151 = math.tanh %150 : vector<2x32xf32>
    %cst_28 = arith.constant 1.000000e+00 : f32
    %152 = vector.broadcast %cst_28 : f32 to vector<2x32xf32>
    %153 = arith.subf %152, %146 : vector<2x32xf32>
    %154 = arith.mulf %153, %151 : vector<2x32xf32>
    %155 = arith.mulf %146, %132 : vector<2x32xf32>
    %156 = arith.addf %154, %155 : vector<2x32xf32>
    %157 = vector.extract_strided_slice %7 {offsets = [0, 6, 0], sizes = [2, 1, 96], strides = [1, 1, 1]} : vector<2x8x96xf32> to vector<2x1x96xf32>
    %158 = vector.shape_cast %157 : vector<2x1x96xf32> to vector<2x96xf32>
    %cst_29 = arith.constant dense<0.000000e+00> : vector<2x96xf32>
    %159 = tpu.matmul %156, %8, %cst_29 {dimension_numbers = #tpu.dot_dimension_numbers<[1], [0], [0], [1], [0, 0, 1, 1], [], []>} : vector<2x32xf32>, vector<32x96xf32>, vector<2x96xf32> -> vector<2x96xf32>
    %160 = arith.addf %159, %11 : vector<2x96xf32>
    %161 = vector.extract_strided_slice %158 {offsets = [0, 0], sizes = [2, 64], strides = [1, 1]} : vector<2x96xf32> to vector<2x64xf32>
    %162 = vector.extract_strided_slice %160 {offsets = [0, 0], sizes = [2, 64], strides = [1, 1]} : vector<2x96xf32> to vector<2x64xf32>
    %163 = arith.addf %161, %162 : vector<2x64xf32>
    %164 = arith.negf %163 : vector<2x64xf32>
    %165 = math.exp %164 : vector<2x64xf32>
    %cst_30 = arith.constant 1.000000e+00 : f32
    %166 = vector.broadcast %cst_30 : f32 to vector<2x64xf32>
    %167 = arith.addf %166, %165 : vector<2x64xf32>
    %168 = arith.divf %166, %167 : vector<2x64xf32>
    %169 = vector.extract_strided_slice %168 {offsets = [0, 0], sizes = [2, 32], strides = [1, 1]} : vector<2x64xf32> to vector<2x32xf32>
    %170 = vector.extract_strided_slice %168 {offsets = [0, 32], sizes = [2, 32], strides = [1, 1]} : vector<2x64xf32> to vector<2x32xf32>
    %171 = vector.extract_strided_slice %158 {offsets = [0, 64], sizes = [2, 32], strides = [1, 1]} : vector<2x96xf32> to vector<2x32xf32>
    %172 = vector.extract_strided_slice %160 {offsets = [0, 64], sizes = [2, 32], strides = [1, 1]} : vector<2x96xf32> to vector<2x32xf32>
    %173 = arith.mulf %169, %172 : vector<2x32xf32>
    %174 = arith.addf %171, %173 : vector<2x32xf32>
    %175 = math.tanh %174 : vector<2x32xf32>
    %cst_31 = arith.constant 1.000000e+00 : f32
    %176 = vector.broadcast %cst_31 : f32 to vector<2x32xf32>
    %177 = arith.subf %176, %170 : vector<2x32xf32>
    %178 = arith.mulf %177, %175 : vector<2x32xf32>
    %179 = arith.mulf %170, %156 : vector<2x32xf32>
    %180 = arith.addf %178, %179 : vector<2x32xf32>
    %181 = vector.extract_strided_slice %7 {offsets = [0, 7, 0], sizes = [2, 1, 96], strides = [1, 1, 1]} : vector<2x8x96xf32> to vector<2x1x96xf32>
    %182 = vector.shape_cast %181 : vector<2x1x96xf32> to vector<2x96xf32>
    %cst_32 = arith.constant dense<0.000000e+00> : vector<2x96xf32>
    %183 = tpu.matmul %180, %8, %cst_32 {dimension_numbers = #tpu.dot_dimension_numbers<[1], [0], [0], [1], [0, 0, 1, 1], [], []>} : vector<2x32xf32>, vector<32x96xf32>, vector<2x96xf32> -> vector<2x96xf32>
    %184 = arith.addf %183, %11 : vector<2x96xf32>
    %185 = vector.extract_strided_slice %182 {offsets = [0, 0], sizes = [2, 64], strides = [1, 1]} : vector<2x96xf32> to vector<2x64xf32>
    %186 = vector.extract_strided_slice %184 {offsets = [0, 0], sizes = [2, 64], strides = [1, 1]} : vector<2x96xf32> to vector<2x64xf32>
    %187 = arith.addf %185, %186 : vector<2x64xf32>
    %188 = arith.negf %187 : vector<2x64xf32>
    %189 = math.exp %188 : vector<2x64xf32>
    %cst_33 = arith.constant 1.000000e+00 : f32
    %190 = vector.broadcast %cst_33 : f32 to vector<2x64xf32>
    %191 = arith.addf %190, %189 : vector<2x64xf32>
    %192 = arith.divf %190, %191 : vector<2x64xf32>
    %193 = vector.extract_strided_slice %192 {offsets = [0, 0], sizes = [2, 32], strides = [1, 1]} : vector<2x64xf32> to vector<2x32xf32>
    %194 = vector.extract_strided_slice %192 {offsets = [0, 32], sizes = [2, 32], strides = [1, 1]} : vector<2x64xf32> to vector<2x32xf32>
    %195 = vector.extract_strided_slice %182 {offsets = [0, 64], sizes = [2, 32], strides = [1, 1]} : vector<2x96xf32> to vector<2x32xf32>
    %196 = vector.extract_strided_slice %184 {offsets = [0, 64], sizes = [2, 32], strides = [1, 1]} : vector<2x96xf32> to vector<2x32xf32>
    %197 = arith.mulf %193, %196 : vector<2x32xf32>
    %198 = arith.addf %195, %197 : vector<2x32xf32>
    %199 = math.tanh %198 : vector<2x32xf32>
    %cst_34 = arith.constant 1.000000e+00 : f32
    %200 = vector.broadcast %cst_34 : f32 to vector<2x32xf32>
    %201 = arith.subf %200, %194 : vector<2x32xf32>
    %202 = arith.mulf %201, %199 : vector<2x32xf32>
    %203 = arith.mulf %194, %180 : vector<2x32xf32>
    %204 = arith.addf %202, %203 : vector<2x32xf32>
    %c0_35 = arith.constant 0 : index
    %c0_36 = arith.constant 0 : index
    %205 = vector.load %arg5[%c0_35, %c0_36] : memref<32x16xf32, #tpu.memory_space<vmem>>, vector<32x16xf32>
    %cst_37 = arith.constant dense<0.000000e+00> : vector<2x16xf32>
    %206 = tpu.matmul %204, %205, %cst_37 {dimension_numbers = #tpu.dot_dimension_numbers<[1], [0], [0], [1], [0, 0, 1, 1], [], []>} : vector<2x32xf32>, vector<32x16xf32>, vector<2x16xf32> -> vector<2x16xf32>
    %c0_38 = arith.constant 0 : index
    %c0_39 = arith.constant 0 : index
    %207 = vector.load %arg6[%c0_38, %c0_39] : memref<1x16xf32, #tpu.memory_space<vmem>>, vector<1x16xf32>
    %208 = vector.broadcast %207 : vector<1x16xf32> to vector<2x16xf32>
    %209 = arith.addf %206, %208 : vector<2x16xf32>
    %c0_40 = arith.constant 0 : index
    %c0_41 = arith.constant 0 : index
    %210 = vector.load %arg7[%c0_40, %c0_41] : memref<2x16xf32, #tpu.memory_space<vmem>>, vector<2x16xf32>
    tpu.vector_store %arg7[%c0_40, %c0_41], %209 {strides = array<i32>} : memref<2x16xf32, #tpu.memory_space<vmem>>, vector<2x16xf32>,
    return
  }
}

</mosaic_0001>

<bundles_post_ra>
// kernel: gru_fc_forward.1
= control target key start
LH: loop header
LB: loop body
LE: loop exit
PB: predicated region body
PF: predicated region fallthrough
CT: control target
= control target key end

     0   :  { %vm44_vm0 = vcmask 1043456   ;;  %v1693_v3 = vmov 0.0|0.0   ;;  %vm37_vm1 = vcmask 31744   ;;  %s1971_s0 = inlined_call_operand.vmem [shape: f32[2,8,4], index: 0, kind: input, shape index: {}]   ;;  %s1972_s1 = inlined_call_operand.vmem [shape: f32[4,96], index: 1, kind: input, shape index: {}]   ;;  %s1973_s2 = inlined_call_operand.vmem [shape: f32[32,96], index: 2, kind: input, shape index: {}]   ;;  %s1974_s3 = inlined_call_operand.vmem [shape: f32[1,96], index: 3, kind: input, shape index: {}]   ;;  %s1975_s4 = inlined_call_operand.vmem [shape: f32[1,96], index: 4, kind: input, shape index: {}]   ;;  %s1976_s5 = inlined_call_operand.vmem [shape: f32[32,16], index: 5, kind: input, shape index: {}]   ;;  %s1977_s6 = inlined_call_operand.vmem [shape: f32[1,16], index: 6, kind: input, shape index: {}]   ;;  %s1978_s7 = inlined_call_operand.hbm [shape: f32[2,16], index: 7, kind: output, shape index: {}]  }
   0x1   :  { %v123_v0 = vld [vmem:[%s1973_s2] sm:$0xff]  ;;  %v124_v1 = vld [vmem:[%s1973_s2 + $0x8] sm:$0xff]  ;;  %1513 = vmatprep.subr.bf16.mxu1 %v1693_v3  ;;  %v125_v5 = vld [vmem:[%s1973_s2 + $0x10] sm:$0xff] }
   0x2   :  { %v29_v2 = vld [vmem:[%s1972_s1] sm:$0xf]  ;;  %v1749_v4 = vpack.c.bf16 %v124_v1, %v123_v0  ;;  %v126_v6 = vld [vmem:[%s1973_s2 + $0x18] sm:$0xff]  ;;  %v28_v8 = vld [vmem:[%s1971_s0 + $0x8] sm:$0xff] }
   0x3   :  { %1409 = vmatprep.subr.msk.mxu0 %vm44_vm0, %v29_v2  ;;  %v27_v7 = vld [vmem:[%s1971_s0] sm:$0xff] }
   0x4   :  { %1410 = vmatpush3.msk.msra.mxu0 %vm44_vm0, %v29_v2  ;;  %1411 = vmatprep.mubr.msk.f32.mxu0 %vm37_vm1, %v27_v7 }
   0x5   :  { %12 = vsyncpa [#allocation3], 0  ;;  %1515 = vmatpush3.bf16.msra.mxu1 %v1749_v4  ;;  %v1764_v9 = vpack.c.bf16 %v126_v6, %v125_v5  ;;  %1412 = vmatmul.mubr.msk.f32.vlgmr.msra.gmra.mrb[0].mxu0 %vm37_vm1, %v28_v8  ;;  %vm1694_vm2 = vmmov 0   ;;  %v1695_v10 = vmov 0.0   ;;  %v1788_v13 = vld [vmem:[%s1975_s4] ss:$0 sm:$0xff] }
   0x6   :  { %1516 = vmatprep.subr.bf16.mxu1 %v1693_v3  ;;  %1422 = vmatprep.mubr.msk.f32.mxu1 %vm1694_vm2, %v1695_v10  ;;  %s1696_s14 = smov 64   ;;  %v1331_v18 = vld [vmem:[%s1974_s3] ss:$0 sm:$0xff]  ;;  %s1697_s3 = smov 96   ;;  %vm265_vm3 = vcmask 1041409   ;;  %vm134_vm4 = vcmask 261120  }
   0x7   :  { %1519 = vmatprep.subr.bf16.mxu0 %v1693_v3  ;;  %1433 = vmatprep.mubr.msk.f32.mxu0 %vm1694_vm2, %v1695_v10  ;;  %s1698_s25 = smov [#allocation2]   ;;  %vm1315_vm5 = vcmask 123904  }
   0x8   :  { %1521 = vmatpush3.bf16.msra.mxu0 %v1749_v4  ;;  %s1323_s26 = sshll.u32 %s1698_s25, 4  ;;  %s1324_s26 = int_to_ptr.vmem [resolvable:$true] %s1323_s26 }
   0x9   :  { %1518 = vmatpush3.bf16.msra.mxu1 %v1764_v9  ;;  %1522 = vmatprep.subr.bf16.mxu0 %v1693_v3  ;;  %s1669_s27 = scalar_lea.vmem %s1324_s26, 32  ;;  %p1674_p1 = scmp.lt.s32.totalorder %s1324_s26, %s1324_s26 }
   0xa   :  { %1525 = vmatprep.subr.bf16.mxu1 %v1693_v3  ;;  %p1670_p0 = scmp.ne.s32.totalorder %s1324_s26, %s1669_s27  ;;  %p1675_p2 = scmp.lt.s32.totalorder %s1669_s27, %s1669_s27 }
   0xc   :  { %1423 = vmatmul.mubr.f32.vlgmr.msra.gmra.mrb[0].mxu1 %v1695_v10  ;;  %1524 = vmatpush3.bf16.msra.mxu0 %v1764_v9  ;;  %p1676_p3 = por %p1675_p2, %p1674_p1 }
   0xd   :  { %1527 = vmatpush3.bf16.msra.mxu1 %v1749_v4  ;;  %1444 = vmatprep.mubr.msk.f32.mxu1 %vm1694_vm2, %v1695_v10 }
   0xe   :  { %1528 = vmatprep.subr.bf16.mxu1 %v1693_v3  ;;  %1531 = vmatprep.subr.bf16.mxu0 %v1693_v3  ;;  %p1677_p4 = pnand %p1676_p3, %p1670_p0 }
  0x11   :  { %1530 = vmatpush3.bf16.msra.mxu1 %v1764_v9 }
  0x12   :  { %1537 = vmatprep.subr.bf16.mxu1 %v1693_v3 }
  0xd8   :  { %v1413_v11 = vpop.f32.mrb[0].mxu0 }
  0xd9   :  { %v114_v12 = vpop.f32.mrb[1].mxu0  ;;  %v1796_v19 = vadd.f32 %v1413_v11, %v1331_v18 }
  0xda   :  { %v1798_v20 = vadd.f32 %v1331_v18, %v114_v12 }
  0xdf   :  { %v204_v14 = vpop.f32.mrb[0].mxu1 }
  0xe0   :  { %v205_v15 = vadd.f32 %v1788_v13, %v204_v14  ;;  %v1424_v16 = vpop.f32.mrb[1].mxu1 }
  0xe2   :  { %v209_v17 = vrot.slane %v205_v15, 1  ;;  %v212_v22 = vadd.f32 %v205_v15, %v1798_v20 }
  0xe4   :  { %228 = vrot.lane.b32.xlu0 %v209_v17, %s1696_s14  ;;  %v213_v21 = vadd.f32 %v209_v17, %v1796_v19  ;;  %v1336_v24 = vmul.f32 -1.442695, %v212_v22 }
  0xe6   :  { %v1337_v23 = vmul.f32 -1.442695, %v213_v21 }
  0xe8   :  { %226 = vrot.lane.b32.xlu0 %v205_v15, %s1696_s14  ;;  %1573 = vpow2.f32 %v1337_v23 }
  0xe9   :  { %1575 = vpow2.f32 %v1336_v24 }
  0xf2   :  { %v1574_v25 = vpop.eup %1573 }
  0xf3   :  { %v221_v26 = vadd.f32 1.0, %v1574_v25  ;;  %v1576_v27 = vpop.eup %1575 }
  0xf4   :  { %v220_v28 = vadd.f32 1.0, %v1576_v27 }
  0xf5   :  { %1577 = vrcp.f32 %v221_v26 }
  0xf6   :  { %1579 = vrcp.f32 %v220_v28 }
  0xff   :  { %v1578_v29 = vpop.eup %1577 }
 0x100   :  { %v1580_v32 = vpop.eup %1579  ;;  %v247_v41 = vsub.f32 1.0, %v1578_v29  ;;  %v259_v43 = vmul.f32 0.0, %v1578_v29 }
 0x101   :  { %v246_v46 = vsub.f32 1.0, %v1580_v32  ;;  %v258_v48 = vmul.f32 0.0, %v1580_v32 }
 0x156   :  { %v229_v30 = vpop.permute.xlu0 %228 }
 0x157   :  { %v233_v31 = vmul.f32 %v1578_v29, %v229_v30 }
 0x159   :  { %238 = vrot.lane.b32.xlu1 %v233_v31, %s1696_s14 }
 0x15a   :  { %v227_v33 = vpop.permute.xlu0 %226 }
 0x15b   :  { %v232_v34 = vmul.f32 %v1580_v32, %v227_v33 }
 0x15d   :  { %236 = vrot.lane.b32.xlu1 %v232_v34, %s1696_s14 }
 0x1cb   :  { %v239_v35 = vpop.permute.xlu1 %238 }
 0x1cc   :  { %v243_v36 = vadd.f32 %v239_v35, %v1796_v19 }
 0x1ce   :  { %1581 = vtanh.f32 %v243_v36 }
 0x1cf   :  { %v237_v37 = vpop.permute.xlu1 %236 }
 0x1d0   :  { %v242_v38 = vadd.f32 %v237_v37, %v1798_v20 }
 0x1d2   :  { %1583 = vtanh.f32 %v242_v38 }
 0x1d8   :  { %v1582_v39 = vpop.eup %1581 }
 0x1d9   :  { %252 = vrot.lane.b32.xlu0 %v1582_v39, %s1697_s3 }
 0x1dc   :  { %v1584_v40 = vpop.eup %1583 }
 0x1dd   :  { %250 = vrot.lane.b32.xlu1 %v1584_v40, %s1697_s3 }
 0x24b   :  { %v253_v42 = vpop.permute.xlu0 %252 }
 0x24c   :  { %v257_v44 = vmul.f32 %v253_v42, %v247_v41 }
 0x24e   :  { %v1808_v45 = vadd.f32 %v259_v43, %v257_v44 }
 0x24f   :  { %v251_v47 = vpop.permute.xlu1 %250 }
 0x250   :  { %v256_v49 = vmul.f32 %v251_v47, %v246_v46  ;;  %v264_v50 = vrot.slane %v1808_v45, 7 }
 0x252   :  { %v260_v51 = vadd.f32 %v258_v48, %v256_v49 }
 0x254   :  { %v266_v52 = vsel %vm265_vm3, %v264_v50, %v260_v51  ;;  %v391_v22 = vrot.slane %v260_v51, 7 }
 0x255   :  { %267 = vrot.lane.b32.xlu0 %v266_v52, %s1697_s3 }
 0x2c7   :  { %v268_v53 = vpop.permute.xlu0 %267 }
 0x2c8   :  { %1434 = vmatmul.mubr.msk.f32.vlgmr.msra.gmra.mrb[2].mxu0 %vm134_vm4, %v268_v53 }
 0x2c9   :  { %1533 = vmatpush3.bf16.msra.mxu0 %v1749_v4  ;;  %1455 = vmatprep.mubr.msk.f32.mxu0 %vm1694_vm2, %v1695_v10 }
 0x2ca   :  { %1534 = vmatprep.subr.bf16.mxu0 %v1693_v3 }
 0x2cd   :  { %1536 = vmatpush3.bf16.msra.mxu0 %v1764_v9 }
 0x2ce   :  { %1543 = vmatprep.subr.bf16.mxu0 %v1693_v3 }
 0x39b   :  { %v337_v54 = vpop.f32.mrb[2].mxu0 }
 0x39c   :  { %v338_v55 = vadd.f32 %v1788_v13, %v337_v54  ;;  %v1435_v56 = vpop.f32.mrb[3].mxu0 }
 0x39e   :  { %361 = vrot.lane.b32.xlu0 %v338_v55, %s1696_s14  ;;  %v342_v57 = vrot.slane %v338_v55, 7  ;;  %v346_v58 = vadd.f32 %v338_v55, %v1796_v19 }
 0x3a0   :  { %359 = vrot.lane.b32.xlu1 %v342_v57, %s1696_s14  ;;  %v345_v59 = vadd.f32 %v342_v57, %v1798_v20  ;;  %v1340_v60 = vmul.f32 -1.442695, %v346_v58 }
 0x3a2   :  { %v1339_v61 = vmul.f32 -1.442695, %v345_v59  ;;  %1585 = vpow2.f32 %v1340_v60 }
 0x3a4   :  { %1587 = vpow2.f32 %v1339_v61 }
 0x3ac   :  { %v1586_v62 = vpop.eup %1585 }
 0x3ad   :  { %v354_v0 = vadd.f32 1.0, %v1586_v62 }
 0x3ae   :  { %v1588_v63 = vpop.eup %1587 }
 0x3af   :  { %v353_v1 = vadd.f32 1.0, %v1588_v63  ;;  %1589 = vrcp.f32 %v354_v0 }
 0x3b1   :  { %1591 = vrcp.f32 %v353_v1 }
 0x3b9   :  { %v1590_v2 = vpop.eup %1589 }
 0x3ba   :  { %v380_v23 = vsub.f32 1.0, %v1590_v2  ;;  %v395_v29 = vmul.f32 %v1590_v2, %v264_v50 }
 0x3bb   :  { %v1592_v7 = vpop.eup %1591 }
 0x3bc   :  { %v379_v24 = vsub.f32 1.0, %v1592_v7  ;;  %v394_v27 = vmul.f32 %v1592_v7, %v391_v22 }
 0x410   :  { %v362_v5 = vpop.permute.xlu0 %361 }
 0x411   :  { %v366_v6 = vmul.f32 %v1590_v2, %v362_v5 }
 0x412   :  { %v360_v8 = vpop.permute.xlu1 %359 }
 0x413   :  { %v365_v11 = vmul.f32 %v1592_v7, %v360_v8  ;;  %371 = vrot.lane.b32.xlu0 %v366_v6, %s1696_s14 }
 0x415   :  { %369 = vrot.lane.b32.xlu1 %v365_v11, %s1696_s14 }
 0x485   :  { %v372_v12 = vpop.permute.xlu0 %371 }
 0x486   :  { %v376_v14 = vadd.f32 %v372_v12, %v1796_v19 }
 0x487   :  { %v370_v15 = vpop.permute.xlu1 %369 }
 0x488   :  { %1593 = vtanh.f32 %v376_v14  ;;  %v375_v16 = vadd.f32 %v370_v15, %v1798_v20 }
 0x48a   :  { %1595 = vtanh.f32 %v375_v16 }
 0x492   :  { %v1594_v17 = vpop.eup %1593 }
 0x493   :  { %385 = vrot.lane.b32.xlu0 %v1594_v17, %s1697_s3 }
 0x494   :  { %v1596_v18 = vpop.eup %1595 }
 0x495   :  { %383 = vrot.lane.b32.xlu1 %v1596_v18, %s1697_s3 }
 0x505   :  { %v386_v21 = vpop.permute.xlu0 %385 }
 0x506   :  { %v390_v26 = vmul.f32 %v386_v21, %v380_v23 }
 0x507   :  { %v384_v25 = vpop.permute.xlu1 %383 }
 0x508   :  { %v389_v28 = vmul.f32 %v384_v25, %v379_v24  ;;  %v397_v31 = vadd.f32 %v395_v29, %v390_v26 }
 0x50a   :  { %v396_v30 = vadd.f32 %v394_v27, %v389_v28  ;;  %v528_v60 = vrot.slane %v397_v31, 7 }
 0x50c   :  { %v400_v32 = vrot.slane %v396_v30, 1  ;;  %v527_v62 = vrot.slane %v396_v30, 7 }
 0x50e   :  { %v401_v33 = vsel %vm265_vm3, %v397_v31, %v400_v32 }
 0x50f   :  { %402 = vrot.lane.b32.xlu1 %v401_v33, %s1697_s3 }
 0x581   :  { %v403_v34 = vpop.permute.xlu1 %402 }
 0x582   :  { %1445 = vmatmul.mubr.msk.f32.vlgmr.msra.gmra.mrb[2].mxu1 %vm134_vm4, %v403_v34 }
 0x583   :  { %1539 = vmatpush3.bf16.msra.mxu1 %v1749_v4  ;;  %1466 = vmatprep.mubr.msk.f32.mxu1 %vm1694_vm2, %v1695_v10 }
 0x584   :  { %1540 = vmatprep.subr.bf16.mxu1 %v1693_v3 }
 0x587   :  { %1542 = vmatpush3.bf16.msra.mxu1 %v1764_v9 }
 0x588   :  { %1549 = vmatprep.subr.bf16.mxu1 %v1693_v3 }
 0x655   :  { %v472_v35 = vpop.f32.mrb[2].mxu1 }
 0x656   :  { %v473_v36 = vadd.f32 %v1788_v13, %v472_v35  ;;  %v1446_v37 = vpop.f32.mrb[3].mxu1 }
 0x658   :  { %v477_v38 = vrot.slane %v473_v36, 6  ;;  %v478_v39 = vrot.slane %v473_v36, 7 }
 0x65a   :  { %497 = vrot.lane.b32.xlu1 %v478_v39, %s1696_s14  ;;  %495 = vrot.lane.b32.xlu0 %v477_v38, %s1696_s14  ;;  %v481_v40 = vadd.f32 %v477_v38, %v1798_v20  ;;  %v482_v41 = vadd.f32 %v478_v39, %v1796_v19 }
 0x65c   :  { %v1342_v42 = vmul.f32 -1.442695, %v481_v40  ;;  %v1343_v43 = vmul.f32 -1.442695, %v482_v41 }
 0x65e   :  { %1597 = vpow2.f32 %v1342_v42 }
 0x65f   :  { %1599 = vpow2.f32 %v1343_v43 }
 0x668   :  { %v1598_v44 = vpop.eup %1597 }
 0x669   :  { %v1600_v45 = vpop.eup %1599  ;;  %v489_v46 = vadd.f32 1.0, %v1598_v44 }
 0x66a   :  { %v490_v47 = vadd.f32 1.0, %v1600_v45 }
 0x66b   :  { %1601 = vrcp.f32 %v489_v46 }
 0x66c   :  { %1603 = vrcp.f32 %v490_v47 }
 0x675   :  { %v1602_v48 = vpop.eup %1601 }
 0x676   :  { %v1604_v49 = vpop.eup %1603  ;;  %v515_v0 = vsub.f32 1.0, %v1602_v48  ;;  %v531_v6 = vmul.f32 %v1602_v48, %v527_v62 }
 0x677   :  { %v516_v61 = vsub.f32 1.0, %v1604_v49  ;;  %v532_v1 = vmul.f32 %v1604_v49, %v528_v60 }
 0x6cc   :  { %v498_v50 = vpop.permute.xlu1 %497  ;;  %v496_v51 = vpop.permute.xlu0 %495 }
 0x6cd   :  { %v502_v52 = vmul.f32 %v1604_v49, %v498_v50  ;;  %v501_v53 = vmul.f32 %v1602_v48, %v496_v51 }
 0x6cf   :  { %507 = vrot.lane.b32.xlu1 %v502_v52, %s1696_s14  ;;  %505 = vrot.lane.b32.xlu0 %v501_v53, %s1696_s14 }
 0x741   :  { %v508_v54 = vpop.permute.xlu1 %507  ;;  %v506_v55 = vpop.permute.xlu0 %505 }
 0x742   :  { %v512_v56 = vadd.f32 %v508_v54, %v1796_v19  ;;  %v511_v57 = vadd.f32 %v506_v55, %v1798_v20 }
 0x744   :  { %1605 = vtanh.f32 %v512_v56 }
 0x745   :  { %1607 = vtanh.f32 %v511_v57 }
 0x74e   :  { %v1606_v58 = vpop.eup %1605 }
 0x74f   :  { %v1608_v59 = vpop.eup %1607  ;;  %521 = vrot.lane.b32.xlu1 %v1606_v58, %s1697_s3 }
 0x750   :  { %519 = vrot.lane.b32.xlu0 %v1608_v59, %s1697_s3 }
 0x7c1   :  { %v522_v63 = vpop.permute.xlu1 %521 }
 0x7c2   :  { %v526_v2 = vmul.f32 %v522_v63, %v516_v61  ;;  %v520_v5 = vpop.permute.xlu0 %519 }
 0x7c3   :  { %v525_v7 = vmul.f32 %v520_v5, %v515_v0 }
 0x7c4   :  { %v534_v8 = vadd.f32 %v532_v1, %v526_v2 }
 0x7c5   :  { %v533_v11 = vadd.f32 %v531_v6, %v525_v7 }
 0x7c6   :  { %v538_v12 = vrot.slane %v534_v8, 1  ;;  %v666_v44 = vrot.slane %v534_v8, 7 }
 0x7c7   :  { %v537_v14 = vrot.slane %v533_v11, 2  ;;  %v665_v46 = vrot.slane %v533_v11, 7 }
 0x7c9   :  { %v539_v15 = vsel %vm265_vm3, %v538_v12, %v537_v14 }
 0x7ca   :  { %540 = vrot.lane.b32.xlu0 %v539_v15, %s1697_s3 }
 0x83c   :  { %v541_v16 = vpop.permute.xlu0 %540 }
 0x83d   :  { %1456 = vmatmul.mubr.msk.f32.vlgmr.msra.gmra.mrb[4].mxu0 %vm134_vm4, %v541_v16 }
 0x83e   :  { %1545 = vmatpush3.bf16.msra.mxu0 %v1749_v4  ;;  %1477 = vmatprep.mubr.msk.f32.mxu0 %vm1694_vm2, %v1695_v10 }
 0x83f   :  { %1546 = vmatprep.subr.bf16.mxu0 %v1693_v3 }
 0x842   :  { %1548 = vmatpush3.bf16.msra.mxu0 %v1764_v9 }
 0x843   :  { %1555 = vmatprep.subr.bf16.mxu0 %v1693_v3 }
 0x910   :  { %v610_v17 = vpop.f32.mrb[4].mxu0 }
 0x911   :  { %v611_v18 = vadd.f32 %v1788_v13, %v610_v17  ;;  %v1457_v21 = vpop.f32.mrb[5].mxu0 }
 0x913   :  { %v615_v22 = vrot.slane %v611_v18, 5  ;;  %v616_v23 = vrot.slane %v611_v18, 6 }
 0x915   :  { %635 = vrot.lane.b32.xlu0 %v616_v23, %s1696_s14  ;;  %633 = vrot.lane.b32.xlu1 %v615_v22, %s1696_s14  ;;  %v619_v24 = vadd.f32 %v615_v22, %v1798_v20  ;;  %v620_v25 = vadd.f32 %v616_v23, %v1796_v19 }
 0x917   :  { %v1345_v26 = vmul.f32 -1.442695, %v619_v24  ;;  %v1346_v27 = vmul.f32 -1.442695, %v620_v25 }
 0x919   :  { %1609 = vpow2.f32 %v1345_v26 }
 0x91a   :  { %1611 = vpow2.f32 %v1346_v27 }
 0x923   :  { %v1610_v28 = vpop.eup %1609 }
 0x924   :  { %v1612_v29 = vpop.eup %1611  ;;  %v627_v30 = vadd.f32 1.0, %v1610_v28 }
 0x925   :  { %v628_v31 = vadd.f32 1.0, %v1612_v29 }
 0x926   :  { %1613 = vrcp.f32 %v627_v30 }
 0x927   :  { %1615 = vrcp.f32 %v628_v31 }
 0x930   :  { %v1614_v32 = vpop.eup %1613 }
 0x931   :  { %v1616_v33 = vpop.eup %1615  ;;  %v653_v48 = vsub.f32 1.0, %v1614_v32  ;;  %v669_v52 = vmul.f32 %v1614_v32, %v665_v46 }
 0x932   :  { %v654_v45 = vsub.f32 1.0, %v1616_v33  ;;  %v670_v49 = vmul.f32 %v1616_v33, %v666_v44 }
 0x987   :  { %v636_v34 = vpop.permute.xlu0 %635  ;;  %v634_v35 = vpop.permute.xlu1 %633 }
 0x988   :  { %v640_v36 = vmul.f32 %v1616_v33, %v636_v34  ;;  %v639_v37 = vmul.f32 %v1614_v32, %v634_v35 }
 0x98a   :  { %645 = vrot.lane.b32.xlu0 %v640_v36, %s1696_s14  ;;  %643 = vrot.lane.b32.xlu1 %v639_v37, %s1696_s14 }
 0x9fc   :  { %v646_v38 = vpop.permute.xlu0 %645  ;;  %v644_v39 = vpop.permute.xlu1 %643 }
 0x9fd   :  { %v650_v40 = vadd.f32 %v646_v38, %v1796_v19  ;;  %v649_v41 = vadd.f32 %v644_v39, %v1798_v20 }
 0x9ff   :  { %1617 = vtanh.f32 %v650_v40 }
 0xa00   :  { %1619 = vtanh.f32 %v649_v41 }
 0xa09   :  { %v1618_v42 = vpop.eup %1617 }
 0xa0a   :  { %v1620_v43 = vpop.eup %1619  ;;  %659 = vrot.lane.b32.xlu0 %v1618_v42, %s1697_s3 }
 0xa0b   :  { %657 = vrot.lane.b32.xlu1 %v1620_v43, %s1697_s3 }
 0xa7c   :  { %v660_v47 = vpop.permute.xlu0 %659 }
 0xa7d   :  { %v664_v50 = vmul.f32 %v660_v47, %v654_v45  ;;  %v658_v51 = vpop.permute.xlu1 %657 }
 0xa7e   :  { %v663_v53 = vmul.f32 %v658_v51, %v653_v48 }
 0xa7f   :  { %v672_v54 = vadd.f32 %v670_v49, %v664_v50 }
 0xa80   :  { %v671_v55 = vadd.f32 %v669_v52, %v663_v53 }
 0xa81   :  { %v676_v56 = vrot.slane %v672_v54, 2  ;;  %v804_v28 = vrot.slane %v672_v54, 7 }
 0xa82   :  { %v675_v57 = vrot.slane %v671_v55, 3  ;;  %v803_v30 = vrot.slane %v671_v55, 7 }
 0xa84   :  { %v677_v58 = vsel %vm265_vm3, %v676_v56, %v675_v57 }
 0xa85   :  { %678 = vrot.lane.b32.xlu1 %v677_v58, %s1697_s3 }
 0xaf7   :  { %v679_v59 = vpop.permute.xlu1 %678 }
 0xaf8   :  { %1467 = vmatmul.mubr.msk.f32.vlgmr.msra.gmra.mrb[4].mxu1 %vm134_vm4, %v679_v59 }
 0xaf9   :  { %1551 = vmatpush3.bf16.msra.mxu1 %v1749_v4  ;;  %1488 = vmatprep.mubr.msk.f32.mxu1 %vm1694_vm2, %v1695_v10 }
 0xafa   :  { %1552 = vmatprep.subr.bf16.mxu1 %v1693_v3 }
 0xafd   :  { %1554 = vmatpush3.bf16.msra.mxu1 %v1764_v9 }
 0xafe   :  { %1561 = vmatprep.subr.bf16.mxu1 %v1693_v3 }
 0xbcb   :  { %v748_v60 = vpop.f32.mrb[4].mxu1 }
 0xbcc   :  { %v749_v61 = vadd.f32 %v1788_v13, %v748_v60  ;;  %v1468_v62 = vpop.f32.mrb[5].mxu1 }
 0xbce   :  { %v753_v63 = vrot.slane %v749_v61, 4  ;;  %v754_v0 = vrot.slane %v749_v61, 5 }
 0xbd0   :  { %773 = vrot.lane.b32.xlu1 %v754_v0, %s1696_s14  ;;  %771 = vrot.lane.b32.xlu0 %v753_v63, %s1696_s14  ;;  %v757_v1 = vadd.f32 %v753_v63, %v1798_v20  ;;  %v758_v2 = vadd.f32 %v754_v0, %v1796_v19 }
 0xbd2   :  { %v1348_v5 = vmul.f32 -1.442695, %v757_v1  ;;  %v1349_v6 = vmul.f32 -1.442695, %v758_v2 }
 0xbd4   :  { %1621 = vpow2.f32 %v1348_v5 }
 0xbd5   :  { %1623 = vpow2.f32 %v1349_v6 }
 0xbde   :  { %v1622_v7 = vpop.eup %1621 }
 0xbdf   :  { %v1624_v8 = vpop.eup %1623  ;;  %v765_v11 = vadd.f32 1.0, %v1622_v7 }
 0xbe0   :  { %v766_v12 = vadd.f32 1.0, %v1624_v8 }
 0xbe1   :  { %1625 = vrcp.f32 %v765_v11 }
 0xbe2   :  { %1627 = vrcp.f32 %v766_v12 }
 0xbeb   :  { %v1626_v14 = vpop.eup %1625 }
 0xbec   :  { %v1628_v15 = vpop.eup %1627  ;;  %v791_v32 = vsub.f32 1.0, %v1626_v14  ;;  %v807_v36 = vmul.f32 %v1626_v14, %v803_v30 }
 0xbed   :  { %v792_v29 = vsub.f32 1.0, %v1628_v15  ;;  %v808_v33 = vmul.f32 %v1628_v15, %v804_v28 }
 0xc42   :  { %v774_v16 = vpop.permute.xlu1 %773  ;;  %v772_v17 = vpop.permute.xlu0 %771 }
 0xc43   :  { %v778_v18 = vmul.f32 %v1628_v15, %v774_v16  ;;  %v777_v21 = vmul.f32 %v1626_v14, %v772_v17 }
 0xc45   :  { %783 = vrot.lane.b32.xlu1 %v778_v18, %s1696_s14  ;;  %781 = vrot.lane.b32.xlu0 %v777_v21, %s1696_s14 }
 0xcb7   :  { %v784_v22 = vpop.permute.xlu1 %783  ;;  %v782_v23 = vpop.permute.xlu0 %781 }
 0xcb8   :  { %v788_v24 = vadd.f32 %v784_v22, %v1796_v19  ;;  %v787_v25 = vadd.f32 %v782_v23, %v1798_v20 }
 0xcba   :  { %1629 = vtanh.f32 %v788_v24 }
 0xcbb   :  { %1631 = vtanh.f32 %v787_v25 }
 0xcc4   :  { %v1630_v26 = vpop.eup %1629 }
 0xcc5   :  { %v1632_v27 = vpop.eup %1631  ;;  %797 = vrot.lane.b32.xlu1 %v1630_v26, %s1697_s3 }
 0xcc6   :  { %795 = vrot.lane.b32.xlu0 %v1632_v27, %s1697_s3 }
 0xd37   :  { %v798_v31 = vpop.permute.xlu1 %797 }
 0xd38   :  { %v802_v34 = vmul.f32 %v798_v31, %v792_v29  ;;  %v796_v35 = vpop.permute.xlu0 %795 }
 0xd39   :  { %v801_v37 = vmul.f32 %v796_v35, %v791_v32 }
 0xd3a   :  { %v810_v38 = vadd.f32 %v808_v33, %v802_v34 }
 0xd3b   :  { %v809_v39 = vadd.f32 %v807_v36, %v801_v37 }
 0xd3c   :  { %v814_v40 = vrot.slane %v810_v38, 3  ;;  %v942_v5 = vrot.slane %v810_v38, 7 }
 0xd3d   :  { %v813_v41 = vrot.slane %v809_v39, 4  ;;  %v941_v7 = vrot.slane %v809_v39, 7 }
 0xd3f   :  { %v815_v42 = vsel %vm265_vm3, %v814_v40, %v813_v41 }
 0xd40   :  { %816 = vrot.lane.b32.xlu0 %v815_v42, %s1697_s3 }
 0xdb2   :  { %v817_v43 = vpop.permute.xlu0 %816 }
 0xdb3   :  { %1478 = vmatmul.mubr.msk.f32.vlgmr.msra.gmra.mrb[6].mxu0 %vm134_vm4, %v817_v43 }
 0xdb4   :  { %1557 = vmatpush3.bf16.msra.mxu0 %v1749_v4  ;;  %1499 = vmatprep.mubr.msk.f32.mxu0 %vm1694_vm2, %v1695_v10 }
 0xdb5   :  { %1558 = vmatprep.subr.bf16.mxu0 %v1693_v3 }
 0xdb8   :  { %1560 = vmatpush3.bf16.msra.mxu0 %v1764_v9 }
 0xe86   :  { %v886_v44 = vpop.f32.mrb[6].mxu0 }
 0xe87   :  { %v887_v45 = vadd.f32 %v1788_v13, %v886_v44  ;;  %v1479_v46 = vpop.f32.mrb[7].mxu0 }
 0xe89   :  { %v891_v47 = vrot.slane %v887_v45, 3  ;;  %v892_v48 = vrot.slane %v887_v45, 4 }
 0xe8b   :  { %911 = vrot.lane.b32.xlu0 %v892_v48, %s1696_s14  ;;  %909 = vrot.lane.b32.xlu1 %v891_v47, %s1696_s14  ;;  %v895_v49 = vadd.f32 %v891_v47, %v1798_v20  ;;  %v896_v4 = vadd.f32 %v892_v48, %v1796_v19 }
 0xe8d   :  { %v1351_v50 = vmul.f32 -1.442695, %v895_v49  ;;  %v1352_v51 = vmul.f32 -1.442695, %v896_v4 }
 0xe8f   :  { %1633 = vpow2.f32 %v1351_v50 }
 0xe90   :  { %1635 = vpow2.f32 %v1352_v51 }
 0xe99   :  { %v1634_v52 = vpop.eup %1633 }
 0xe9a   :  { %v1636_v9 = vpop.eup %1635  ;;  %v903_v53 = vadd.f32 1.0, %v1634_v52 }
 0xe9b   :  { %v904_v54 = vadd.f32 1.0, %v1636_v9 }
 0xe9c   :  { %1637 = vrcp.f32 %v903_v53 }
 0xe9d   :  { %1639 = vrcp.f32 %v904_v54 }
 0xea6   :  { %v1638_v55 = vpop.eup %1637 }
 0xea7   :  { %v1640_v56 = vpop.eup %1639  ;;  %v929_v11 = vsub.f32 1.0, %v1638_v55  ;;  %v945_v16 = vmul.f32 %v1638_v55, %v941_v7 }
 0xea8   :  { %v930_v6 = vsub.f32 1.0, %v1640_v56  ;;  %v946_v12 = vmul.f32 %v1640_v56, %v942_v5 }
 0xefd   :  { %v912_v57 = vpop.permute.xlu0 %911  ;;  %v910_v58 = vpop.permute.xlu1 %909 }
 0xefe   :  { %v916_v59 = vmul.f32 %v1640_v56, %v912_v57  ;;  %v915_v60 = vmul.f32 %v1638_v55, %v910_v58 }
 0xf00   :  { %921 = vrot.lane.b32.xlu0 %v916_v59, %s1696_s14  ;;  %919 = vrot.lane.b32.xlu1 %v915_v60, %s1696_s14 }
 0xf72   :  { %v922_v61 = vpop.permute.xlu0 %921  ;;  %v920_v62 = vpop.permute.xlu1 %919 }
 0xf73   :  { %v926_v63 = vadd.f32 %v922_v61, %v1796_v19  ;;  %v925_v0 = vadd.f32 %v920_v62, %v1798_v20 }
 0xf75   :  { %1641 = vtanh.f32 %v926_v63 }
 0xf76   :  { %1643 = vtanh.f32 %v925_v0 }
 0xf7f   :  { %v1642_v1 = vpop.eup %1641 }
 0xf80   :  { %v1644_v2 = vpop.eup %1643  ;;  %935 = vrot.lane.b32.xlu0 %v1642_v1, %s1697_s3 }
 0xf81   :  { %933 = vrot.lane.b32.xlu1 %v1644_v2, %s1697_s3 }
 0xff2   :  { %v936_v8 = vpop.permute.xlu0 %935 }
 0xff3   :  { %v940_v14 = vmul.f32 %v936_v8, %v930_v6  ;;  %v934_v15 = vpop.permute.xlu1 %933 }
 0xff4   :  { %v939_v17 = vmul.f32 %v934_v15, %v929_v11 }
 0xff5   :  { %v948_v18 = vadd.f32 %v946_v12, %v940_v14 }
 0xff6   :  { %v947_v21 = vadd.f32 %v945_v16, %v939_v17 }
 0xff7   :  { %v952_v22 = vrot.slane %v948_v18, 4  ;;  %v1080_v4 = vrot.slane %v948_v18, 7 }
 0xff8   :  { %v951_v23 = vrot.slane %v947_v21, 5  ;;  %v1079_v51 = vrot.slane %v947_v21, 7 }
 0xffa   :  { %v953_v24 = vsel %vm265_vm3, %v952_v22, %v951_v23 }
 0xffb   :  { %954 = vrot.lane.b32.xlu1 %v953_v24, %s1697_s3 }
0x106d   :  { %v955_v25 = vpop.permute.xlu1 %954 }
0x106e   :  { %1489 = vmatmul.mubr.msk.f32.vlgmr.msra.gmra.mrb[6].mxu1 %vm134_vm4, %v955_v25 }
0x106f   :  { %1510 = vmatprep.mubr.msk.f32.mxu1 %vm1694_vm2, %v1695_v10 }
0x1141   :  { %v1024_v26 = vpop.f32.mrb[6].mxu1 }
0x1142   :  { %v1025_v27 = vadd.f32 %v1788_v13, %v1024_v26  ;;  %v1490_v28 = vpop.f32.mrb[7].mxu1 }
0x1144   :  { %v1029_v29 = vrot.slane %v1025_v27, 2  ;;  %v1030_v30 = vrot.slane %v1025_v27, 3 }
0x1146   :  { %1049 = vrot.lane.b32.xlu1 %v1030_v30, %s1696_s14  ;;  %1047 = vrot.lane.b32.xlu0 %v1029_v29, %s1696_s14  ;;  %v1033_v31 = vadd.f32 %v1029_v29, %v1798_v20  ;;  %v1034_v32 = vadd.f32 %v1030_v30, %v1796_v19  ;;  %v1225_v29 = vld [vmem:[%s1976_s5] sm:$0xff]  ;;  %v1226_v30 = vld [vmem:[%s1976_s5 + $0x8] sm:$0xff] }
0x1148   :  { %v1354_v33 = vmul.f32 -1.442695, %v1033_v31  ;;  %v1355_v34 = vmul.f32 -1.442695, %v1034_v32  ;;  %v1227_v31 = vld [vmem:[%s1976_s5 + $0x10] sm:$0xff]  ;;  %v1562_v32 = vpack.c.bf16 %v1226_v30, %v1225_v29 }
0x114a   :  { %1645 = vpow2.f32 %v1354_v33  ;;  %1563 = vmatpush3.bf16.msra.mxu1 %v1562_v32 }
0x114b   :  { %1647 = vpow2.f32 %v1355_v34  ;;  %1564 = vmatprep.subr.bf16.mxu1 %v1693_v3 }
0x1154   :  { %v1646_v35 = vpop.eup %1645 }
0x1155   :  { %v1648_v10 = vpop.eup %1647  ;;  %v1041_v36 = vadd.f32 1.0, %v1646_v35 }
0x1156   :  { %v1042_v37 = vadd.f32 1.0, %v1648_v10 }
0x1157   :  { %1649 = vrcp.f32 %v1041_v36 }
0x1158   :  { %1651 = vrcp.f32 %v1042_v37 }
0x1161   :  { %v1650_v38 = vpop.eup %1649 }
0x1162   :  { %v1652_v39 = vpop.eup %1651  ;;  %v1067_v9 = vsub.f32 1.0, %v1650_v38  ;;  %v1083_v56 = vmul.f32 %v1650_v38, %v1079_v51 }
0x1163   :  { %v1068_v50 = vsub.f32 1.0, %v1652_v39  ;;  %v1084_v53 = vmul.f32 %v1652_v39, %v1080_v4 }
0x11b8   :  { %v1050_v40 = vpop.permute.xlu1 %1049  ;;  %v1048_v41 = vpop.permute.xlu0 %1047 }
0x11b9   :  { %v1054_v42 = vmul.f32 %v1652_v39, %v1050_v40  ;;  %v1053_v43 = vmul.f32 %v1650_v38, %v1048_v41 }
0x11bb   :  { %1059 = vrot.lane.b32.xlu1 %v1054_v42, %s1696_s14  ;;  %1057 = vrot.lane.b32.xlu0 %v1053_v43, %s1696_s14 }
0x122d   :  { %v1060_v44 = vpop.permute.xlu1 %1059  ;;  %v1058_v45 = vpop.permute.xlu0 %1057 }
0x122e   :  { %v1064_v46 = vadd.f32 %v1060_v44, %v1796_v19  ;;  %v1063_v47 = vadd.f32 %v1058_v45, %v1798_v20 }
0x1230   :  { %1653 = vtanh.f32 %v1064_v46 }
0x1231   :  { %1655 = vtanh.f32 %v1063_v47 }
0x123a   :  { %v1654_v48 = vpop.eup %1653 }
0x123b   :  { %v1656_v49 = vpop.eup %1655  ;;  %1073 = vrot.lane.b32.xlu1 %v1654_v48, %s1697_s3 }
0x123c   :  { %1071 = vrot.lane.b32.xlu0 %v1656_v49, %s1697_s3  ;;  %v1359_v49 = vld [vmem:[%s1977_s6] ss:$0 sm:$0xff] }
0x12ad   :  { %v1074_v52 = vpop.permute.xlu1 %1073 }
0x12ae   :  { %v1078_v54 = vmul.f32 %v1074_v52, %v1068_v50  ;;  %v1072_v55 = vpop.permute.xlu0 %1071 }
0x12af   :  { %v1077_v57 = vmul.f32 %v1072_v55, %v1067_v9 }
0x12b0   :  { %v1086_v58 = vadd.f32 %v1084_v53, %v1078_v54 }
0x12b1   :  { %v1085_v59 = vadd.f32 %v1083_v56, %v1077_v57 }
0x12b2   :  { %v1090_v60 = vrot.slane %v1086_v58, 5  ;;  %v1218_v35 = vrot.slane %v1086_v58, 7 }
0x12b3   :  { %v1089_v61 = vrot.slane %v1085_v59, 6  ;;  %v1217_v36 = vrot.slane %v1085_v59, 7 }
0x12b5   :  { %v1091_v62 = vsel %vm265_vm3, %v1090_v60, %v1089_v61 }
0x12b6   :  { %1092 = vrot.lane.b32.xlu0 %v1091_v62, %s1697_s3 }
0x1328   :  { %v1093_v63 = vpop.permute.xlu0 %1092 }
0x1329   :  { %1500 = vmatmul.mubr.msk.f32.vlgmr.msra.gmra.mrb[8].mxu0 %vm134_vm4, %v1093_v63 }
0x13fc   :  { %v1162_v0 = vpop.f32.mrb[8].mxu0 }
0x13fd   :  { %v1163_v1 = vadd.f32 %v1788_v13, %v1162_v0  ;;  %v1501_v2 = vpop.f32.mrb[9].mxu0 }
0x13ff   :  { %v1167_v5 = vrot.slane %v1163_v1, 1  ;;  %v1168_v6 = vrot.slane %v1163_v1, 2 }
0x1401   :  { %1187 = vrot.lane.b32.xlu0 %v1168_v6, %s1696_s14  ;;  %1185 = vrot.lane.b32.xlu1 %v1167_v5, %s1696_s14  ;;  %v1171_v7 = vadd.f32 %v1167_v5, %v1798_v20  ;;  %v1172_v8 = vadd.f32 %v1168_v6, %v1796_v19 }
0x1403   :  { %v1357_v11 = vmul.f32 -1.442695, %v1171_v7  ;;  %v1358_v12 = vmul.f32 -1.442695, %v1172_v8 }
0x1405   :  { %1657 = vpow2.f32 %v1357_v11 }
0x1406   :  { %1659 = vpow2.f32 %v1358_v12 }
0x140f   :  { %v1658_v14 = vpop.eup %1657 }
0x1410   :  { %v1660_v15 = vpop.eup %1659  ;;  %v1179_v16 = vadd.f32 1.0, %v1658_v14 }
0x1411   :  { %v1180_v17 = vadd.f32 1.0, %v1660_v15 }
0x1412   :  { %1661 = vrcp.f32 %v1179_v16 }
0x1413   :  { %1663 = vrcp.f32 %v1180_v17 }
0x141c   :  { %v1662_v13 = vpop.eup %1661 }
0x141d   :  { %v1664_v18 = vpop.eup %1663  ;;  %v1205_v38 = vsub.f32 1.0, %v1662_v13  ;;  %v1221_v42 = vmul.f32 %v1662_v13, %v1217_v36 }
0x141e   :  { %v1206_v10 = vsub.f32 1.0, %v1664_v18  ;;  %v1222_v39 = vmul.f32 %v1664_v18, %v1218_v35 }
0x1473   :  { %v1188_v21 = vpop.permute.xlu0 %1187  ;;  %v1186_v22 = vpop.permute.xlu1 %1185 }
0x1474   :  { %v1192_v23 = vmul.f32 %v1664_v18, %v1188_v21  ;;  %v1191_v24 = vmul.f32 %v1662_v13, %v1186_v22 }
0x1476   :  { %1197 = vrot.lane.b32.xlu0 %v1192_v23, %s1696_s14  ;;  %1195 = vrot.lane.b32.xlu1 %v1191_v24, %s1696_s14 }
0x14e8   :  { %v1198_v25 = vpop.permute.xlu0 %1197  ;;  %v1196_v26 = vpop.permute.xlu1 %1195 }
0x14e9   :  { %v1202_v27 = vadd.f32 %v1198_v25, %v1796_v19  ;;  %v1201_v28 = vadd.f32 %v1196_v26, %v1798_v20  ;;  %v1228_v19 = vld [vmem:[%s1976_s5 + $0x18] sm:$0xff] }
0x14ea   :  { %v1565_v20 = vpack.c.bf16 %v1228_v19, %v1227_v31 }
0x14eb   :  { %1665 = vtanh.f32 %v1202_v27 }
0x14ec   :  { %1667 = vtanh.f32 %v1201_v28  ;;  %1566 = vmatpush3.bf16.msra.mxu1 %v1565_v20 }
0x14f5   :  { %v1666_v33 = vpop.eup %1665 }
0x14f6   :  { %v1668_v34 = vpop.eup %1667  ;;  %1211 = vrot.lane.b32.xlu0 %v1666_v33, %s1697_s3 }
0x14f7   :  { %1209 = vrot.lane.b32.xlu1 %v1668_v34, %s1697_s3 }
0x1568   :  { %v1212_v37 = vpop.permute.xlu0 %1211 }
0x1569   :  { %v1216_v40 = vmul.f32 %v1212_v37, %v1206_v10  ;;  %v1210_v41 = vpop.permute.xlu1 %1209 }
0x156a   :  { %v1215_v43 = vmul.f32 %v1210_v41, %v1205_v38 }
0x156b   :  { %v1224_v44 = vadd.f32 %v1222_v39, %v1216_v40 }
0x156c   :  { %v1223_v45 = vadd.f32 %v1221_v42, %v1215_v43 }
0x156d   :  { %v1239_v46 = vrot.slane %v1224_v44, 6 }
0x156e   :  { %v1238_v3 = vrot.slane %v1223_v45, 7 }
0x1570   :  { %v1240_v47 = vsel %vm265_vm3, %v1239_v46, %v1238_v3 }
0x1571   :  { %1241 = vrot.lane.b32.xlu1 %v1240_v47, %s1697_s3 }
0x15e3   :  { %v1242_v48 = vpop.permute.xlu1 %1241 }
0x15e4   :  { %1511 = vmatmul.mubr.msk.f32.vlgmr.msra.gmra.mrb[8].mxu1 %vm134_vm4, %v1242_v48 }
0x16b7   :  { %v1311_v4 = vpop.f32.mrb[8].mxu1 }
0x16b8   :  { %v1312_v50 = vadd.f32 %v1359_v49, %v1311_v4  ;;  %v1512_v51 = vpop.f32.mrb[9].mxu1 }
0x16ba   :  { %1316 = vst.msk [vmem:[#allocation2] sm:$0x3] %vm1315_vm5, %v1312_v50 }
0x16bb   :  { %1680 = shalt.err (!%p1677_p4)
}
0x16bc   :  { %s1681_s30 = scalar_lea.hbm %s1978_s7, 32 }
0x16bd   :  { %p1682_p5 = scmp.ne.s32.totalorder %s1978_s7, %s1681_s30  ;;  %p1685_p6 = scmp.lt.u32.totalorder %s1681_s30, %s1978_s7 }
0x16bf   :  { %p1687_p7 = pnand %p1685_p6, %p1682_p5 }
0x16c1   :  { %1690 = shalt.err (!%p1687_p7)
}
0x16c2   :  { %1326 = dma.vmem_to_hbm [thread:$0]  %s1324_s26, 32, %s1978_s7, [#allocation3]  }
0x16c3   :  { %1691 = dma.done.wait [#allocation3], 32  }
0x16c4   :  { %1692 = vsyncadd [#allocation3], 4294967264 }
0x16c5   :  { %1330 = vsyncpa [#allocation3], 1 }

</bundles_post_ra>
